<compile_context>
chip_gen: v7x
topology: tpu7x:2x2x1
jax: 0.10.0
libtpu: 0.0.40
codegen_flags: <defaults>
</compile_context>

<pallas_src>
import math
from functools import lru_cache, partial

import numpy as np
import jax
import jax.numpy as jnp
from jax.experimental import pallas as pl
from jax.experimental.pallas import tpu as pltpu


def _spectral_kernel(x_ref, wkblk_ref, bk_ref, wvblk_ref, bv_ref,
                     cre_ref, cim_ref, wvec_ref, o_ref,
                     ctx_r_scr, ctx_i_scr, *, valid_f):
    """One grid step = `Bb` batch elements, all in native (C, N) layout.

    x_ref    : (Bb, C, N) f32        input block (native module layout)
    wkblk_ref: (Bb*C, Bb*C) bf16     block-diag fc_K weight * C**-0.5/sqrt(N)
    bk_ref   : (Bb*C, Fp)  f32       fc_K bias folded into the DC bin
    wvblk_ref: (Bb*C, Bb*C) bf16     block-diag fc_V weight
    bv_ref   : (Bb*C, Fp)  f32       fc_V bias folded into the DC bin
    cre_ref  : (N, Fp) bf16          cos(2*pi*n*f/N), zero for padded f >= F
    cim_ref  : (N, Fp) bf16          -sin(2*pi*n*f/N), zero for padded f >= F
    wvec_ref : (1, Fp) f32           irfft bin weights w_f / sqrt(N)
    o_ref    : (Bb, C, N)            output block
    ctx_*_scr: (Bb*C, Fp) f32        VMEM scratch for the contexts
    """
    Bb, C, N = x_ref.shape
    Fp = cre_ref.shape[1]

    def mm(a, b):                                   # a @ b, f32 accumulate
        return jnp.dot(a, b, preferred_element_type=jnp.float32)

    def mm_nt(a, b):                                # contract last dims (a @ b.T)
        return jax.lax.dot_general(
            a, b, (((1,), (1,)), ((), ())), preferred_element_type=jnp.float32)

    def mm_tn(a, b):                                # contract first dims (a.T @ b)
        return jax.lax.dot_general(
            a, b, (((0,), (0,)), ((), ())), preferred_element_type=jnp.float32)

    cre = cre_ref[...]                              # (N, Fp) bf16
    cim = cim_ref[...]

    # ---- forward real DFT ('backward' norm) for all (batch, channel) rows ---
    xs = x_ref[...].reshape(Bb * C, N).astype(jnp.bfloat16)
    xf_r = mm(xs, cre)                              # (Bb*C, Fp) f32
    xf_i = mm(xs, cim)

    # ---- K = s * rfft(fc_K(x)), V = rfft(fc_V(x)); linear commutes with DFT,
    #      bias only feeds the (real) DC bin.
    xf_r16 = xf_r.astype(jnp.bfloat16)
    xf_i16 = xf_i.astype(jnp.bfloat16)
    k_r = mm(wkblk_ref[...], xf_r16) + bk_ref[...]  # (Bb*C, Fp) f32
    k_i = mm(wkblk_ref[...], xf_i16)
    v_r = mm(wvblk_ref[...], xf_r16) + bv_ref[...]
    v_i = mm(wvblk_ref[...], xf_i16)

    # Stack real/imag along the contraction (channel) axis -> 2C-deep matmuls.
    def stack2(a, b):
        return jnp.concatenate(
            [a.reshape(Bb, C, Fp), b.reshape(Bb, C, Fp)], axis=1
        ).astype(jnp.bfloat16)                      # (Bb, 2C, Fp)

    q_cat = stack2(xf_r, xf_i)                      # [q_r ;  q_i]
    k_a = stack2(k_r, -k_i)                         # [k_r ; -k_i]  -> Re(Q K^T)
    k_b = stack2(k_i, k_r)                          # [k_i ;  k_r]  -> Im(Q K^T)
    v_cat = stack2(v_r, v_i)                        # [v_r ;  v_i]

    # Padded query-frequency rows must be excluded from the softmax (dim=-2).
    row_valid = jax.lax.broadcasted_iota(jnp.int32, (Fp, 1), 0) < valid_f

    for b in range(Bb):                             # unrolled; all ops are 2-D
        # attention = (Q @ K^T) * C**-0.5  (scale already folded into K)
        a_r = mm_tn(q_cat[b], k_a[b])               # (Fp, Fp) f32
        a_i = mm_tn(q_cat[b], k_b[b])
        mag = jnp.sqrt(a_r * a_r + a_i * a_i)       # abs(complex attention)
        mag = jnp.where(row_valid, mag, -1e30)

        # softmax over the query-frequency axis (rows), statistics kept in f32
        m = jnp.max(mag, axis=0, keepdims=True)
        e = jnp.exp(mag - m)
        att = e * pl.reciprocal(jnp.sum(e, axis=0, keepdims=True), approx=True)

        # context = complex(att, 0) @ V, kept channel-major: (2C, Fq)
        ctx = mm_nt(v_cat[b], att.astype(jnp.bfloat16))
        ctx_r_scr[pl.ds(b * C, C), :] = ctx[:C, :]
        ctx_i_scr[pl.ds(b * C, C), :] = ctx[C:, :]

    # ---- irfft(context, n=N, norm='ortho'): reuse the forward bases, each bin
    #      weighted by w_f/sqrt(N); -sin is 0 at DC/Nyquist so their imaginary
    #      parts drop out, matching the c2r convention.
    wvec = wvec_ref[...]                            # (1, Fp) f32
    cr = (ctx_r_scr[...] * wvec).astype(jnp.bfloat16)
    ci = (ctx_i_scr[...] * wvec).astype(jnp.bfloat16)
    out = mm_nt(cr, cre) + mm_nt(ci, cim)           # (Bb*C, N) f32
    o_ref[...] = out.reshape(Bb, C, N).astype(o_ref.dtype)


def _round_up(x, m):
    return ((x + m - 1) // m) * m


@lru_cache(maxsize=None)
def _dft_bases(N, Fp):
    """cos / -sin real-DFT bases (bf16, zero-padded to Fp bins) and the irfft
    'ortho' bin weights (f32).  Cached so they are built/uploaded once."""
    F = N // 2 + 1
    ang = 2.0 * np.pi * np.outer(np.arange(N), np.arange(F)) / N    # (N, F)
    cre = np.zeros((N, Fp), np.float32)
    cim = np.zeros((N, Fp), np.float32)
    cre[:, :F] = np.cos(ang)
    cim[:, :F] = -np.sin(ang)
    w = np.full((F,), 2.0, np.float32)
    w[0] = 1.0
    if N % 2 == 0:
        w[-1] = 1.0                                  # Nyquist bin (even N only)
    wvec = np.zeros((1, Fp), np.float32)
    wvec[0, :F] = w / np.sqrt(N)
    return (jnp.asarray(cre, jnp.bfloat16), jnp.asarray(cim, jnp.bfloat16),
            jnp.asarray(wvec, jnp.float32))


def _pick_block_b(B, C, *, max_rows=256):
    """Largest batch block keeping >= 4 grid steps (>= 2 as fallback) and
    Bb*C <= max_rows (MXU-native contraction / sublane width)."""
    cap = max(1, min(B, max_rows // max(C, 1)))
    for min_steps in (4, 2):
        best = 0
        for bb in range(1, cap + 1):
            if B % bb == 0 and B // bb >= min_steps:
                best = bb
        if best:
            return best
    return 1


@partial(jax.jit, static_argnums=(8, 9))
def _forward(x, wk, bk, wv, bv, cre, cim, wvec, Bb, Fp):
    B, C, N = x.shape
    F = N // 2 + 1
    BC = Bb * C

    # Fold attention scale C**-0.5 and Q's 'ortho' 1/sqrt(N) into fc_K, build
    # block-diagonal weights so the per-batch channel linears become one
    # stacked matmul, and fold the biases into the DC bin (rfft of a constant
    # is N*const at f=0).  Weights feed the MXU in bf16.
    s = (C ** -0.5) / math.sqrt(N)
    eye_b = jnp.eye(Bb, dtype=jnp.float32)
    wk_blk = jnp.kron(eye_b, wk.astype(jnp.float32) * s).astype(jnp.bfloat16)
    wv_blk = jnp.kron(eye_b, wv.astype(jnp.float32)).astype(jnp.bfloat16)
    bk_dc = jnp.tile(bk.astype(jnp.float32) * (N * s), Bb)
    bv_dc = jnp.tile(bv.astype(jnp.float32) * float(N), Bb)
    bk_st = jnp.zeros((BC, Fp), jnp.float32).at[:, 0].set(bk_dc)
    bv_st = jnp.zeros((BC, Fp), jnp.float32).at[:, 0].set(bv_dc)

    def rep(shape):
        # Grid-invariant operand: full-array block, single-buffered (no 2x
        # VMEM for the big DFT bases; Pallas skips re-fetch on unchanged idx).
        nd = len(shape)
        return pl.BlockSpec(shape, lambda b: (0,) * nd,
                            pipeline_mode=pl.Buffered(1))

    out = pl.pallas_call(
        partial(_spectral_kernel, valid_f=F),
        out_shape=jax.ShapeDtypeStruct((B, C, N), x.dtype),
        grid=(B // Bb,),
        in_specs=[
            pl.BlockSpec((Bb, C, N), lambda b: (b, 0, 0)),    # x (per-step)
            rep((BC, BC)), rep((BC, Fp)),                     # fc_K (scaled)
            rep((BC, BC)), rep((BC, Fp)),                     # fc_V
            rep((N, Fp)), rep((N, Fp)),                       # DFT bases (bf16)
            rep((1, Fp)),                                     # irfft weights
        ],
        out_specs=pl.BlockSpec((Bb, C, N), lambda b: (b, 0, 0)),
        scratch_shapes=[pltpu.VMEM((BC, Fp), jnp.float32),
                        pltpu.VMEM((BC, Fp), jnp.float32)],
        compiler_params=pltpu.CompilerParams(
            dimension_semantics=("parallel",),
            # Below v7x's 64 MiB physical VMEM; raises v5e/v6e scoped default.
            vmem_limit_bytes=48 * 1024 * 1024),
    )(x, wk_blk, bk_st, wv_blk, bv_st, cre, cim, wvec)
    return out


def adaptive_spectral_block(x_bcn, wk, bk, wv, bv, *, block_b=None):
    """Forward of Adaptive_Spectral_Block_c_old; x_bcn is (B, C, N) = (B, dim, seq)."""
    B, C, N = x_bcn.shape
    F = N // 2 + 1
    # Pad the frequency axis to the lane width once it is large; keep x8 for
    # tiny F so the Fp^2 attention padding work stays negligible.
    Fp = _round_up(F, 128) if F >= 128 else _round_up(F, 8)
    Bb = _pick_block_b(B, C) if block_b is None else block_b
    assert B % Bb == 0, "block_b must divide the batch size"
    cre, cim, wvec = _dft_bases(N, Fp)
    return _forward(jnp.asarray(x_bcn), jnp.asarray(wk), jnp.asarray(bk),
                    jnp.asarray(wv), jnp.asarray(bv), cre, cim, wvec, Bb, Fp)


def reference(x_bcn, wk, bk, wv, bv):
    """Pure-JAX reference reproducing the PyTorch forward semantics."""
    x = jnp.transpose(x_bcn, (0, 2, 1)).astype(jnp.float32)     # (B, N, C)
    _, N, C = x.shape
    q = jnp.fft.rfft(x, axis=1, norm="ortho")
    k = jnp.fft.rfft(x @ wk.T + bk, axis=1)
    v = jnp.fft.rfft(x @ wv.T + bv, axis=1)
    att = jnp.matmul(q, jnp.transpose(k, (0, 2, 1))) * (C ** -0.5)
    att = jax.nn.softmax(jnp.abs(att), axis=-2)
    ctx = jnp.matmul(att.astype(jnp.complex64), v)
    y = jnp.fft.irfft(ctx, n=N, axis=1, norm="ortho").astype(x_bcn.dtype)
    return jnp.transpose(y, (0, 2, 1))                          # (B, C, N)


if __name__ == "__main__":
    # (B, C, N): even N with F-padding, multi-batch block (Bb=2), and odd N.
    configs = [(2, 8, 16), (8, 8, 24), (2, 8, 15)]
    key = jax.random.PRNGKey(0)

    for (B, C, N) in configs:
        key, kx, kwk, kbk, kwv, kbv = jax.random.split(key, 6)
        x = jax.random.normal(kx, (B, C, N), jnp.float32)
        bound = 1.0 / math.sqrt(C)          # PyTorch nn.Linear default init
        wk = jax.random.uniform(kwk, (C, C), jnp.float32, -bound, bound)
        bk = jax.random.uniform(kbk, (C,), jnp.float32, -bound, bound)
        wv = jax.random.uniform(kwv, (C, C), jnp.float32, -bound, bound)
        bv = jax.random.uniform(kbv, (C,), jnp.float32, -bound, bound)

        out = jax.block_until_ready(adaptive_spectral_block(x, wk, bk, wv, bv))

        with jax.default_matmul_precision("highest"):
            ref = jax.block_until_ready(reference(x, wk, bk, wv, bv))

        # bf16 MXU operands (per perf review) -> check error relative to the
        # output scale rather than element-wise rtol.
        diff = float(jnp.max(jnp.abs(out.astype(jnp.float32)
                                     - ref.astype(jnp.float32))))
        scale = max(1.0, float(jnp.max(jnp.abs(ref))))
        assert diff <= 8e-2 * scale, \
            f"(B={B},C={C},N={N}) max abs err {diff} vs scale {scale}"

    print("KERNEL_OK")
</pallas_src>

<mosaic_0001>
module attributes {stable_mosaic.version = 11 : i64} {
  func.func @_spectral_kernel(%arg0: i32, %arg1: memref<1x8x16xf32, #tpu.memory_space<vmem>>, %arg2: memref<8x8xbf16, #tpu.memory_space<vmem>>, %arg3: memref<8x16xf32, #tpu.memory_space<vmem>>, %arg4: memref<8x8xbf16, #tpu.memory_space<vmem>>, %arg5: memref<8x16xf32, #tpu.memory_space<vmem>>, %arg6: memref<16x16xbf16, #tpu.memory_space<vmem>>, %arg7: memref<16x16xbf16, #tpu.memory_space<vmem>>, %arg8: memref<1x16xf32, #tpu.memory_space<vmem>>, %arg9: memref<1x8x16xf32, #tpu.memory_space<vmem>>, %arg10: memref<8x16xf32, #tpu.memory_space<vmem>>, %arg11: memref<8x16xf32, #tpu.memory_space<vmem>>) attributes {dimension_semantics = [#tpu.dimension_semantics<parallel>], iteration_bounds = array<i64: 2>, scalar_prefetch = 0 : i64, scratch_operands = 2 : i64, tpu.core_type = #tpu.core_type<tc>, window_params = [{transform_indices = @transform_0, window_bounds = array<i64: 1, 8, 16>}, {pipeline_mode = #tpu.pipeline_mode<synchronous>, transform_indices = @transform_1, window_bounds = array<i64: 8, 8>}, {pipeline_mode = #tpu.pipeline_mode<synchronous>, transform_indices = @transform_2, window_bounds = array<i64: 8, 16>}, {pipeline_mode = #tpu.pipeline_mode<synchronous>, transform_indices = @transform_3, window_bounds = array<i64: 8, 8>}, {pipeline_mode = #tpu.pipeline_mode<synchronous>, transform_indices = @transform_4, window_bounds = array<i64: 8, 16>}, {pipeline_mode = #tpu.pipeline_mode<synchronous>, transform_indices = @transform_5, window_bounds = array<i64: 16, 16>}, {pipeline_mode = #tpu.pipeline_mode<synchronous>, transform_indices = @transform_6, window_bounds = array<i64: 16, 16>}, {pipeline_mode = #tpu.pipeline_mode<synchronous>, transform_indices = @transform_7, window_bounds = array<i64: 1, 16>}, {transform_indices = @transform_8, window_bounds = array<i64: 1, 8, 16>}]} {
    %c0 = arith.constant 0 : index
    %c0_0 = arith.constant 0 : index
    %0 = vector.load %arg6[%c0, %c0_0] : memref<16x16xbf16, #tpu.memory_space<vmem>>, vector<16x16xbf16>
    %c0_1 = arith.constant 0 : index
    %c0_2 = arith.constant 0 : index
    %1 = vector.load %arg7[%c0_1, %c0_2] : memref<16x16xbf16, #tpu.memory_space<vmem>>, vector<16x16xbf16>
    %c0_3 = arith.constant 0 : index
    %c0_4 = arith.constant 0 : index
    %c0_5 = arith.constant 0 : index
    %2 = vector.load %arg1[%c0_3, %c0_4, %c0_5] : memref<1x8x16xf32, #tpu.memory_space<vmem>>, vector<1x8x16xf32>
    %3 = vector.shape_cast %2 : vector<1x8x16xf32> to vector<8x16xf32>
    %4 = arith.truncf %3 : vector<8x16xf32> to vector<8x16xbf16>
    %cst = arith.constant dense<0.000000e+00> : vector<8x16xf32>
    %5 = tpu.matmul %4, %0, %cst {dimension_numbers = #tpu.dot_dimension_numbers<[1], [0], [0], [1], [0, 0, 1, 1], [], []>} : vector<8x16xbf16>, vector<16x16xbf16>, vector<8x16xf32> -> vector<8x16xf32>
    %cst_6 = arith.constant dense<0.000000e+00> : vector<8x16xf32>
    %6 = tpu.matmul %4, %1, %cst_6 {dimension_numbers = #tpu.dot_dimension_numbers<[1], [0], [0], [1], [0, 0, 1, 1], [], []>} : vector<8x16xbf16>, vector<16x16xbf16>, vector<8x16xf32> -> vector<8x16xf32>
    %7 = arith.truncf %5 : vector<8x16xf32> to vector<8x16xbf16>
    %8 = arith.truncf %6 : vector<8x16xf32> to vector<8x16xbf16>
    %c0_7 = arith.constant 0 : index
    %c0_8 = arith.constant 0 : index
    %9 = vector.load %arg2[%c0_7, %c0_8] : memref<8x8xbf16, #tpu.memory_space<vmem>>, vector<8x8xbf16>
    %cst_9 = arith.constant dense<0.000000e+00> : vector<8x16xf32>
    %10 = tpu.matmul %9, %7, %cst_9 {dimension_numbers = #tpu.dot_dimension_numbers<[1], [0], [0], [1], [0, 0, 1, 1], [], []>} : vector<8x8xbf16>, vector<8x16xbf16>, vector<8x16xf32> -> vector<8x16xf32>
    %c0_10 = arith.constant 0 : index
    %c0_11 = arith.constant 0 : index
    %11 = vector.load %arg3[%c0_10, %c0_11] : memref<8x16xf32, #tpu.memory_space<vmem>>, vector<8x16xf32>
    %12 = arith.addf %10, %11 : vector<8x16xf32>
    %c0_12 = arith.constant 0 : index
    %c0_13 = arith.constant 0 : index
    %13 = vector.load %arg2[%c0_12, %c0_13] : memref<8x8xbf16, #tpu.memory_space<vmem>>, vector<8x8xbf16>
    %cst_14 = arith.constant dense<0.000000e+00> : vector<8x16xf32>
    %14 = tpu.matmul %13, %8, %cst_14 {dimension_numbers = #tpu.dot_dimension_numbers<[1], [0], [0], [1], [0, 0, 1, 1], [], []>} : vector<8x8xbf16>, vector<8x16xbf16>, vector<8x16xf32> -> vector<8x16xf32>
    %c0_15 = arith.constant 0 : index
    %c0_16 = arith.constant 0 : index
    %15 = vector.load %arg4[%c0_15, %c0_16] : memref<8x8xbf16, #tpu.memory_space<vmem>>, vector<8x8xbf16>
    %cst_17 = arith.constant dense<0.000000e+00> : vector<8x16xf32>
    %16 = tpu.matmul %15, %7, %cst_17 {dimension_numbers = #tpu.dot_dimension_numbers<[1], [0], [0], [1], [0, 0, 1, 1], [], []>} : vector<8x8xbf16>, vector<8x16xbf16>, vector<8x16xf32> -> vector<8x16xf32>
    %c0_18 = arith.constant 0 : index
    %c0_19 = arith.constant 0 : index
    %17 = vector.load %arg5[%c0_18, %c0_19] : memref<8x16xf32, #tpu.memory_space<vmem>>, vector<8x16xf32>
    %18 = arith.addf %16, %17 : vector<8x16xf32>
    %c0_20 = arith.constant 0 : index
    %c0_21 = arith.constant 0 : index
    %19 = vector.load %arg4[%c0_20, %c0_21] : memref<8x8xbf16, #tpu.memory_space<vmem>>, vector<8x8xbf16>
    %cst_22 = arith.constant dense<0.000000e+00> : vector<8x16xf32>
    %20 = tpu.matmul %19, %8, %cst_22 {dimension_numbers = #tpu.dot_dimension_numbers<[1], [0], [0], [1], [0, 0, 1, 1], [], []>} : vector<8x8xbf16>, vector<8x16xbf16>, vector<8x16xf32> -> vector<8x16xf32>
    %21 = vector.shape_cast %5 : vector<8x16xf32> to vector<1x8x16xf32>
    %22 = vector.shape_cast %6 : vector<8x16xf32> to vector<1x8x16xf32>
    %23 = tpu.concatenate %21, %22 in 1 : vector<1x8x16xf32>, vector<1x8x16xf32> -> vector<1x16x16xf32>
    %24 = arith.truncf %23 : vector<1x16x16xf32> to vector<1x16x16xbf16>
    %cst_23 = arith.constant 0.000000e+00 : f32
    %25 = vector.broadcast %cst_23 : f32 to vector<8x16xf32>
    %26 = arith.subf %25, %14 : vector<8x16xf32>
    %27 = vector.shape_cast %12 : vector<8x16xf32> to vector<1x8x16xf32>
    %28 = vector.shape_cast %26 : vector<8x16xf32> to vector<1x8x16xf32>
    %29 = tpu.concatenate %27, %28 in 1 : vector<1x8x16xf32>, vector<1x8x16xf32> -> vector<1x16x16xf32>
    %30 = arith.truncf %29 : vector<1x16x16xf32> to vector<1x16x16xbf16>
    %31 = vector.shape_cast %14 : vector<8x16xf32> to vector<1x8x16xf32>
    %32 = vector.shape_cast %12 : vector<8x16xf32> to vector<1x8x16xf32>
    %33 = tpu.concatenate %31, %32 in 1 : vector<1x8x16xf32>, vector<1x8x16xf32> -> vector<1x16x16xf32>
    %34 = arith.truncf %33 : vector<1x16x16xf32> to vector<1x16x16xbf16>
    %35 = vector.shape_cast %18 : vector<8x16xf32> to vector<1x8x16xf32>
    %36 = vector.shape_cast %20 : vector<8x16xf32> to vector<1x8x16xf32>
    %37 = tpu.concatenate %35, %36 in 1 : vector<1x8x16xf32>, vector<1x8x16xf32> -> vector<1x16x16xf32>
    %38 = arith.truncf %37 : vector<1x16x16xf32> to vector<1x16x16xbf16>
    %39 = tpu.iota {dimensions = array<i32: 0>} : vector<16x1xi32>
    %c9_i32 = arith.constant 9 : i32
    %40 = vector.broadcast %c9_i32 : i32 to vector<16x1xi32>
    %41 = arith.cmpi slt, %39, %40 : vector<16x1xi32>
    %42 = vector.shape_cast %24 : vector<1x16x16xbf16> to vector<16x16xbf16>
    %43 = vector.shape_cast %30 : vector<1x16x16xbf16> to vector<16x16xbf16>
    %cst_24 = arith.constant dense<0.000000e+00> : vector<16x16xf32>
    %44 = tpu.matmul %42, %43, %cst_24 {dimension_numbers = #tpu.dot_dimension_numbers<[0], [0], [1], [1], [0, 1, 1, 1], [], []>} : vector<16x16xbf16>, vector<16x16xbf16>, vector<16x16xf32> -> vector<16x16xf32>
    %45 = vector.shape_cast %24 : vector<1x16x16xbf16> to vector<16x16xbf16>
    %46 = vector.shape_cast %34 : vector<1x16x16xbf16> to vector<16x16xbf16>
    %cst_25 = arith.constant dense<0.000000e+00> : vector<16x16xf32>
    %47 = tpu.matmul %45, %46, %cst_25 {dimension_numbers = #tpu.dot_dimension_numbers<[0], [0], [1], [1], [0, 1, 1, 1], [], []>} : vector<16x16xbf16>, vector<16x16xbf16>, vector<16x16xf32> -> vector<16x16xf32>
    %48 = arith.mulf %44, %44 : vector<16x16xf32>
    %49 = arith.mulf %47, %47 : vector<16x16xf32>
    %50 = arith.addf %48, %49 : vector<16x16xf32>
    %51 = math.sqrt %50 : vector<16x16xf32>
    %cst_26 = arith.constant -1.000000e+30 : f32
    %52 = vector.shape_cast %41 : vector<16x1xi1> to vector<16x1xi1>
    %53 = vector.broadcast %52 : vector<16x1xi1> to vector<16x16xi1>
    %54 = vector.broadcast %cst_26 : f32 to vector<16x16xf32>
    %55 = arith.select %53, %51, %54 : vector<16x16xi1>, vector<16x16xf32>
    %cst_27 = arith.constant dense<0xFF800000> : vector<16xf32>
    %56 = vector.multi_reduction <maximumf>, %55, %cst_27 [0] : vector<16x16xf32> to vector<16xf32>
    %57 = vector.shape_cast %56 : vector<16xf32> to vector<1x16xf32>
    %58 = vector.broadcast %57 : vector<1x16xf32> to vector<16x16xf32>
    %59 = arith.subf %55, %58 : vector<16x16xf32>
    %60 = math.exp %59 : vector<16x16xf32>
    %cst_28 = arith.constant dense<0.000000e+00> : vector<16xf32>
    %61 = vector.multi_reduction <add>, %60, %cst_28 [0] : vector<16x16xf32> to vector<16xf32>
    %62 = vector.shape_cast %61 : vector<16xf32> to vector<1x16xf32>
    %63 = tpu.reciprocal %62 {approx = true} : vector<1x16xf32> -> vector<1x16xf32>
    %64 = vector.broadcast %63 : vector<1x16xf32> to vector<16x16xf32>
    %65 = arith.mulf %60, %64 : vector<16x16xf32>
    %66 = vector.shape_cast %38 : vector<1x16x16xbf16> to vector<16x16xbf16>
    %67 = arith.truncf %65 : vector<16x16xf32> to vector<16x16xbf16>
    %cst_29 = arith.constant dense<0.000000e+00> : vector<16x16xf32>
    %68 = tpu.matmul %66, %67, %cst_29 {dimension_numbers = #tpu.dot_dimension_numbers<[1], [1], [0], [0], [0, 0, 1, 0], [], []>} : vector<16x16xbf16>, vector<16x16xbf16>, vector<16x16xf32> -> vector<16x16xf32>
    %69 = vector.extract_strided_slice %68 {offsets = [0, 0], sizes = [8, 16], strides = [1, 1]} : vector<16x16xf32> to vector<8x16xf32>
    %c0_30 = arith.constant 0 : index
    %c0_31 = arith.constant 0 : index
    %70 = vector.load %arg10[%c0_30, %c0_31] : memref<8x16xf32, #tpu.memory_space<vmem>>, vector<8x16xf32>
    tpu.vector_store %arg10[%c0_30, %c0_31], %69 {strides = array<i32>} : memref<8x16xf32, #tpu.memory_space<vmem>>, vector<8x16xf32>,
    %71 = vector.extract_strided_slice %68 {offsets = [8, 0], sizes = [8, 16], strides = [1, 1]} : vector<16x16xf32> to vector<8x16xf32>
    %c0_32 = arith.constant 0 : index
    %c0_33 = arith.constant 0 : index
    %72 = vector.load %arg11[%c0_32, %c0_33] : memref<8x16xf32, #tpu.memory_space<vmem>>, vector<8x16xf32>
    tpu.vector_store %arg11[%c0_32, %c0_33], %71 {strides = array<i32>} : memref<8x16xf32, #tpu.memory_space<vmem>>, vector<8x16xf32>,
    %c0_34 = arith.constant 0 : index
    %c0_35 = arith.constant 0 : index
    %73 = vector.load %arg8[%c0_34, %c0_35] : memref<1x16xf32, #tpu.memory_space<vmem>>, vector<1x16xf32>
    %c0_36 = arith.constant 0 : index
    %c0_37 = arith.constant 0 : index
    %74 = vector.load %arg10[%c0_36, %c0_37] : memref<8x16xf32, #tpu.memory_space<vmem>>, vector<8x16xf32>
    %75 = vector.broadcast %73 : vector<1x16xf32> to vector<8x16xf32>
    %76 = arith.mulf %74, %75 : vector<8x16xf32>
    %77 = arith.truncf %76 : vector<8x16xf32> to vector<8x16xbf16>
    %c0_38 = arith.constant 0 : index
    %c0_39 = arith.constant 0 : index
    %78 = vector.load %arg11[%c0_38, %c0_39] : memref<8x16xf32, #tpu.memory_space<vmem>>, vector<8x16xf32>
    %79 = vector.broadcast %73 : vector<1x16xf32> to vector<8x16xf32>
    %80 = arith.mulf %78, %79 : vector<8x16xf32>
    %81 = arith.truncf %80 : vector<8x16xf32> to vector<8x16xbf16>
    %cst_40 = arith.constant dense<0.000000e+00> : vector<8x16xf32>
    %82 = tpu.matmul %77, %0, %cst_40 {dimension_numbers = #tpu.dot_dimension_numbers<[1], [1], [0], [0], [0, 0, 1, 0], [], []>} : vector<8x16xbf16>, vector<16x16xbf16>, vector<8x16xf32> -> vector<8x16xf32>
    %cst_41 = arith.constant dense<0.000000e+00> : vector<8x16xf32>
    %83 = tpu.matmul %81, %1, %cst_41 {dimension_numbers = #tpu.dot_dimension_numbers<[1], [1], [0], [0], [0, 0, 1, 0], [], []>} : vector<8x16xbf16>, vector<16x16xbf16>, vector<8x16xf32> -> vector<8x16xf32>
    %84 = arith.addf %82, %83 : vector<8x16xf32>
    %85 = vector.shape_cast %84 : vector<8x16xf32> to vector<1x8x16xf32>
    %c0_42 = arith.constant 0 : index
    %c0_43 = arith.constant 0 : index
    %c0_44 = arith.constant 0 : index
    %86 = vector.load %arg9[%c0_42, %c0_43, %c0_44] : memref<1x8x16xf32, #tpu.memory_space<vmem>>, vector<1x8x16xf32>
    tpu.vector_store %arg9[%c0_42, %c0_43, %c0_44], %85 {strides = array<i32>} : memref<1x8x16xf32, #tpu.memory_space<vmem>>, vector<1x8x16xf32>,
    return
  }
  func.func @transform_0(%arg0: i32) -> (i32, i32, i32) {
    %c0_i32 = arith.constant 0 : i32
    %c0_i32_0 = arith.constant 0 : i32
    %c0_i32_1 = arith.constant 0 : i32
    return %arg0, %c0_i32, %c0_i32_0 : i32, i32, i32
  }
  func.func @transform_1(%arg0: i32) -> (i32, i32) {
    %c0_i32 = arith.constant 0 : i32
    %c0_i32_0 = arith.constant 0 : i32
    %c0_i32_1 = arith.constant 0 : i32
    return %c0_i32, %c0_i32_0 : i32, i32
  }
  func.func @transform_2(%arg0: i32) -> (i32, i32) {
    %c0_i32 = arith.constant 0 : i32
    %c0_i32_0 = arith.constant 0 : i32
    %c0_i32_1 = arith.constant 0 : i32
    return %c0_i32, %c0_i32_0 : i32, i32
  }
  func.func @transform_3(%arg0: i32) -> (i32, i32) {
    %c0_i32 = arith.constant 0 : i32
    %c0_i32_0 = arith.constant 0 : i32
    %c0_i32_1 = arith.constant 0 : i32
    return %c0_i32, %c0_i32_0 : i32, i32
  }
  func.func @transform_4(%arg0: i32) -> (i32, i32) {
    %c0_i32 = arith.constant 0 : i32
    %c0_i32_0 = arith.constant 0 : i32
    %c0_i32_1 = arith.constant 0 : i32
    return %c0_i32, %c0_i32_0 : i32, i32
  }
  func.func @transform_5(%arg0: i32) -> (i32, i32) {
    %c0_i32 = arith.constant 0 : i32
    %c0_i32_0 = arith.constant 0 : i32
    %c0_i32_1 = arith.constant 0 : i32
    return %c0_i32, %c0_i32_0 : i32, i32
  }
  func.func @transform_6(%arg0: i32) -> (i32, i32) {
    %c0_i32 = arith.constant 0 : i32
    %c0_i32_0 = arith.constant 0 : i32
    %c0_i32_1 = arith.constant 0 : i32
    return %c0_i32, %c0_i32_0 : i32, i32
  }
  func.func @transform_7(%arg0: i32) -> (i32, i32) {
    %c0_i32 = arith.constant 0 : i32
    %c0_i32_0 = arith.constant 0 : i32
    %c0_i32_1 = arith.constant 0 : i32
    return %c0_i32, %c0_i32_0 : i32, i32
  }
  func.func @transform_8(%arg0: i32) -> (i32, i32, i32) {
    %c0_i32 = arith.constant 0 : i32
    %c0_i32_0 = arith.constant 0 : i32
    %c0_i32_1 = arith.constant 0 : i32
    return %arg0, %c0_i32, %c0_i32_0 : i32, i32, i32
  }
}

</mosaic_0001>

<bundles_post_ra>
// kernel: _forward.1
= control target key start
LH: loop header
LB: loop body
LE: loop exit
PB: predicated region body
PF: predicated region fallthrough
CT: control target
= control target key end

     0   :  { %13 = vsyncpa [#allocation5], 0  ;;  %s1447_s0 = inlined_call_operand.vmem [shape: f32[2,8,16], index: 0, kind: input, shape index: {}]   ;;  %s1448_s1 = inlined_call_operand.vmem [shape: bf16[8,8], index: 1, kind: input, shape index: {}]   ;;  %s1449_s2 = inlined_call_operand.vmem [shape: f32[8,16], index: 2, kind: input, shape index: {}]   ;;  %s1450_s3 = inlined_call_operand.vmem [shape: bf16[8,8], index: 3, kind: input, shape index: {}]   ;;  %s1451_s4 = inlined_call_operand.vmem [shape: f32[8,16], index: 4, kind: input, shape index: {}]   ;;  %s1452_s5 = inlined_call_operand.vmem [shape: bf16[16,16], index: 5, kind: input, shape index: {}]   ;;  %s1453_s6 = inlined_call_operand.vmem [shape: bf16[16,16], index: 6, kind: input, shape index: {}]   ;;  %s1454_s7 = inlined_call_operand.vmem [shape: f32[1,16], index: 7, kind: input, shape index: {}]   ;;  %s1455_s8 = inlined_call_operand.hbm [shape: f32[2,8,16], index: 8, kind: output, shape index: {}]  }
   0x1   :  { %15 = vsyncpa [#allocation5 + $0x1], 0  ;;  %s1259_s27 = smov 0   ;;  %s1261_s28 = smov 0  }
   0x2   :  { %s1263_s29 = smov 0   ;;  %s1265_s30 = smov 0  }
   0x3 LB: > { %s1280_s9 = sadd.s32 4294967295, %s1209_s30   ;;  %s977_s10 = sadd.s32 4294967294, %s1209_s30   ;;  %s1209_s30 = sphi %s1265_s30, %s1461_s30   ;;  %s1205_s29 = sphi %s1263_s29, %s1460_s29   ;;  %s1201_s28 = sphi %s1261_s28, %s1459_s28   ;;  %s1197_s27 = sphi %s1259_s27, %s1458_s27  }
   0x4   : > { %s1284_s11 = sadd.s32 1, %s1209_s30   ;;  %s201_s12 = sadd.s32 1, %s1205_s29 }
   0x5   : > { %s198_s13 = ssub.s32 %s1209_s30, %s1284_s11  ;;  %p211_p0 = scmp.ne.s32.totalorder %s1205_s29, %s1201_s28 }
   0x6   : > { %p199_p1 = scmp.eq.s32.totalorder %s198_s13, 0  ;;  %p212_p2 = scmp.eq.s32.totalorder %s1280_s9, 1 }
   0x7   : > { %p217_p3 = scmp.ne.s32.totalorder %s1201_s28, %s1197_s27  ;;  %p218_p4 = scmp.eq.s32.totalorder %s977_s10, 1 }
   0x8   : > { %s1295_s14 = scalar_select %p199_p1, %s1205_s29, %s201_s12  }
   0x9   : > { %p1297_p5 = por %p212_p2, %p211_p0  ;;  %p1301_p6 = por %p218_p4, %p217_p3 }
   0xa   : > { %p980_p7 = scmp.ge.s32.totalorder %s1209_s30, 1  ;;  %p264_p8 = scmp.lt.s32.totalorder %s1209_s30, 3 }
   0xc   : > { %p265_p9 = pnand %p980_p7, %p264_p8 }
   0xd   : > { %v1310_v0 = vld [vmem:[%s1452_s5] sm:$0xff] (!%p265_p9)   ;;  %v1211_v1 = vmov (!%p265_p9), 0.0   ;;  %vm1212_vm0 = vmmov (!%p265_p9), 0   ;;  %p297_p10 = scmp.lt.s32.totalorder (!%p265_p9), %s1280_s9, 1  ;;  %vm314_vm1 = vcmask (!%p265_p9), 130048   ;;  %vm412_vm2 = vcmask (!%p265_p9), 1043456  }
   0xe   : > { %268 = sbr.rel (%p265_p9) target bundleno = 1233 (0x4d1), region = 52  ;;  %1023 = vmatprep.subr.bf16.mxu0 (!%p265_p9), %v1211_v1  ;;  %1029 = vmatprep.subr.bf16.mxu1 (!%p265_p9), %v1211_v1  ;;  %v1317_v2 = vld [vmem:[%s1453_s6] sm:$0xff] (!%p265_p9)   ;;  %vm408_vm3 = vcmask (!%p265_p9), 64512   ;;  %v589_v59 = vlaneseq (!%p265_p9)  ;;  %s294_s23 = sand.u32 (!%p265_p9), 1, %s1201_s28  }
   0xf   : > { %1024 = vmatpush3.bf16.msra.mxu0 (!%p265_p9), %v1310_v0  ;;  %1025 = vmatprep.mubr.msk.bf16.mxu0 (!%p265_p9), %vm1212_vm0, %v1211_v1  ;;  %v406_v18 = vld [vmem:[%s1448_s1] sm:$0xf] (!%p265_p9)  ;;  %s981_s24 = sshll.u32 (!%p265_p9), %s294_s23, 3  ;;  %s905_s18 = scalar_lea.sflag (!%p265_p9), [#allocation5], %s294_s23 }
  0x10   : > { %1030 = vmatpush3.bf16.msra.mxu1 (!%p265_p9), %v1317_v2  ;;  %1031 = vmatprep.mubr.msk.bf16.mxu1 (!%p265_p9), %vm1212_vm0, %v1211_v1  ;;  %v499_v19 = vld [vmem:[%s1450_s3] sm:$0xf] (!%p265_p9)  ;;  %v590_v60 = vshrl.u32 (!%p265_p9), %v589_v59, 7  ;;  %s296_s26 = scalar_lea.vmem (!%p265_p9), [#allocation4], %s981_s24 }
  0x11   : > { %1035 = vmatprep.subr.bf16.mxu0 (!%p265_p9), %v1211_v1  ;;  %1041 = vmatprep.subr.bf16.mxu1 (!%p265_p9), %v1211_v1  ;;  %v407_v20 = vld [vmem:[%s1449_s2] sm:$0xff] (!%p265_p9)  ;;  %s918_s10 = sshll.u32 (!%p265_p9), %s296_s26, 4  ;;  %s1406_s10 = int_to_ptr.vmem [resolvable:$true] %s918_s10 }
  0x12   : > { %v500_v34 = vld [vmem:[%s1451_s4] sm:$0xff] (!%p265_p9)  ;;  %v591_v63 = vadd.s32 (!%p265_p9), 8, %v590_v60  ;;  %s1147_s19 = scalar_lea.vmem (!%p265_p9), %s1406_s10, 128 }
  0x13   : > { %p1148_p11 = scmp.ne.s32.totalorder (!%p265_p9), %s1406_s10, %s1147_s19 }
  0x14   : > { %vm593_vm7 = vcmp.lt.s32.totalorder (!%p265_p9), %v591_v63, 9 }
  0x15   : > { %s298_s21 = scalar_select %p297_p10, %s1280_s9, 1 }
  0x16   : > { %p1149_p12 = pnand %p1148_p11, %p1297_p5 }
  0x17   : > { %s982_s22 = sshll.u32 %s298_s21, 3 }
  0x18   : > { %s300_s25 = scalar_lea.vmem %s1447_s0, %s982_s22  ;;  %p1150_p13 = pneg %p1149_p12 }
  0x19   : > { %v306_v3 = vld [vmem:[%s300_s25] sm:$0xff]  ;;  %s998_s25 = sshll.u32 %s1280_s9, 7  ;;  %s1213_s9 = smov [#allocation4]  }
  0x1a   : > { %v307_v4 = vpack.c.bf16 %v306_v3, %v306_v3  ;;  %s1404_s17 = scalar_lea.hbm %s1455_s8, %s998_s25  ;;  %s1151_s20 = sshll.u32 %s1213_s9, 4  ;;  %s1152_s20 = int_to_ptr.vmem [resolvable:$false] %s1151_s20 }
  0x1b   : > { %s1153_s21 = scalar_lea.vmem %s1152_s20, 256  ;;  %p1154_p0 = scmp.lt.s32.totalorder %s1406_s10, %s1152_s20 }
  0x1c   : > { %1026 = vmatmul.mubr.msk.bf16.vlgmr.msra.gmra.mrb[0].mxu0 %vm314_vm1, %v307_v4  ;;  %1032 = vmatmul.mubr.msk.bf16.vlgmr.msra.gmra.mrb[0].mxu1 %vm314_vm1, %v307_v4  ;;  %p1155_p1 = scmp.lt.s32.totalorder %s1153_s21, %s1147_s19 }
  0x1d   : > { %1037 = vmatprep.mubr.msk.bf16.mxu0 %vm1212_vm0, %v1211_v1  ;;  %1043 = vmatprep.mubr.msk.bf16.mxu1 %vm1212_vm0, %v1211_v1 }
  0x1e   : > { %p1156_p2 = por %p1155_p1, %p1154_p0 }
  0x20   : > { %p1157_p3 = pnand %p1156_p2, %p1150_p13 }
  0xef   : > { %v352_v5 = vpop.f32.mrb[0].mxu0  ;;  %v398_v6 = vpop.f32.mrb[0].mxu1 }
  0xf0   : > { %v404_v7 = vpack.c.bf16 %v352_v5, %v352_v5  ;;  %v405_v8 = vpack.c.bf16 %v398_v6, %v398_v6  ;;  %v1027_v9 = vpop.f32.mrb[1].mxu0  ;;  %v1033_v10 = vpop.f32.mrb[1].mxu1  ;;  %v584_v11 = vpack.c.bf16 %v398_v6, %v352_v5 }
  0xf1   : > { %v355_v12 = vpop.f32.mrb[2].mxu0  ;;  %v401_v13 = vpop.f32.mrb[2].mxu1 }
  0xf2   : > { %v1034_v14 = vpop.f32.mrb[3].mxu1  ;;  %594 = vxpose.xlu0.c.b16.start.end [1/1] (short) (narrow) %v584_v11, 16  ;;  %v1028_v15 = vpop.f32.mrb[3].mxu0  ;;  %v414_v16 = vsel %vm412_vm2, %v404_v7, 0  ;;  %v457_v17 = vsel %vm412_vm2, %v405_v8, 0 }
  0xf3   : > { %1036 = vmatpush3.bf16.msra.mxu0 %v414_v16  ;;  %1042 = vmatpush3.bf16.msra.mxu1 %v457_v17 }
  0xf4   : > { %1047 = vmatprep.subr.bf16.mxu0 %v1211_v1  ;;  %1053 = vmatprep.subr.bf16.mxu1 %v1211_v1 }
  0xf6   : > { %1038 = vmatmul.mubr.msk.bf16.vlgmr.msra.gmra.mrb[4].mxu0 %vm408_vm3, %v406_v18  ;;  %1044 = vmatmul.mubr.msk.bf16.vlgmr.msra.gmra.mrb[4].mxu1 %vm408_vm3, %v406_v18 }
  0xf7   : > { %1048 = vmatpush3.bf16.msra.mxu0 %v414_v16  ;;  %1054 = vmatpush3.bf16.msra.mxu1 %v457_v17 }
  0xf8   : > { %1049 = vmatprep.mubr.msk.bf16.mxu0 %vm1212_vm0, %v1211_v1  ;;  %1055 = vmatprep.mubr.msk.bf16.mxu1 %vm1212_vm0, %v1211_v1 }
  0xf9   : > { %1059 = vmatprep.subr.bf16.mxu0 %v1211_v1  ;;  %1065 = vmatprep.subr.bf16.mxu1 %v1211_v1 }
  0xfe   : > { %1050 = vmatmul.mubr.msk.bf16.vlgmr.msra.gmra.mrb[8].mxu0 %vm408_vm3, %v499_v19  ;;  %1056 = vmatmul.mubr.msk.bf16.vlgmr.msra.gmra.mrb[8].mxu1 %vm408_vm3, %v499_v19 }
  0xff   : > { %1067 = vmatprep.mubr.msk.bf16.mxu1 %vm1212_vm0, %v1211_v1  ;;  %1061 = vmatprep.mubr.msk.bf16.mxu0 %vm1212_vm0, %v1211_v1 }
 0x158   : > { %v602_v33 = vpop.trf.xlu0 }
 0x1c9   : > { %v450_v21 = vpop.f32.mrb[4].mxu0  ;;  %v493_v22 = vpop.f32.mrb[4].mxu1 }
 0x1ca   : > { %v451_v23 = vadd.f32 %v450_v21, %v407_v20  ;;  %v585_v24 = vsub.f32 0.0, %v493_v22  ;;  %v1039_v25 = vpop.f32.mrb[5].mxu0  ;;  %v1045_v26 = vpop.f32.mrb[5].mxu1 }
 0x1cb   : > { %v453_v27 = vpop.f32.mrb[6].mxu0  ;;  %v496_v28 = vpop.f32.mrb[6].mxu1 }
 0x1cc   : > { %v586_v29 = vpack.c.bf16 %v585_v24, %v451_v23  ;;  %v587_v30 = vpack.c.bf16 %v451_v23, %v493_v22  ;;  %v1040_v31 = vpop.f32.mrb[7].mxu0  ;;  %v1046_v32 = vpop.f32.mrb[7].mxu1 }
 0x1ce   : > { %1060 = vmatpush3.bf16.msra.mxu0 %v586_v29  ;;  %1066 = vmatpush3.bf16.msra.mxu1 %v587_v30 }
 0x1cf   : > { %1071 = vmatprep.subr.bf16.mxu0 %v1211_v1  ;;  %1077 = vmatprep.subr.bf16.mxu1 %v1211_v1 }
 0x1d1   : > { %1062 = vmatmul.mubr.msk.bf16.vlgmr.msra.gmra.mrb[12].mxu0 %vm314_vm1, %v602_v33  ;;  %1068 = vmatmul.mubr.msk.bf16.vlgmr.msra.gmra.mrb[12].mxu1 %vm314_vm1, %v602_v33  ;;  %v538_v35 = vpop.f32.mrb[8].mxu0  ;;  %v1370_v36 = vpop.f32.mrb[8].mxu1 }
 0x1d2   : > { %1073 = vmatprep.mubr.msk.bf16.mxu0 %vm1212_vm0, %v1211_v1  ;;  %1079 = vmatprep.mubr.msk.bf16.mxu1 %vm1212_vm0, %v1211_v1  ;;  %v1372_v37 = vadd.f32 %v538_v35, %v500_v34  ;;  %v1051_v38 = vpop.f32.mrb[9].mxu0  ;;  %v1057_v39 = vpop.f32.mrb[9].mxu1 }
 0x1d3   : > { %v541_v40 = vpop.f32.mrb[10].mxu0  ;;  %v581_v41 = vpop.f32.mrb[10].mxu1 }
 0x1d4   : > { %v588_v42 = vpack.c.bf16 %v1370_v36, %v1372_v37  ;;  %v1052_v43 = vpop.f32.mrb[11].mxu0  ;;  %v1058_v44 = vpop.f32.mrb[11].mxu1  ;;  %v994_v36 = vld [vmem:[%s1454_s7] ss:$0 sm:$0xff] }
 0x1d5   : > { %v815_v44 = vsel %vm314_vm1, %v1317_v2, 0 }
 0x1d7   : > { %1078 = vmatpush3.bf16.xpose.msra.mxu1 %v815_v44 }
 0x1d8   : > { %1083 = vmatprep.subr.bf16.mxu1 %v1211_v1 }
 0x2a4   : > { %v647_v45 = vpop.f32.mrb[12].mxu0  ;;  %v688_v46 = vpop.f32.mrb[12].mxu1 }
 0x2a5   : > { %v695_v47 = vmul.f32 %v647_v45, %v647_v45  ;;  %v697_v48 = vmul.f32 %v688_v46, %v688_v46  ;;  %v1063_v49 = vpop.f32.mrb[13].mxu0  ;;  %v1069_v50 = vpop.f32.mrb[13].mxu1 }
 0x2a6   : > { %v650_v51 = vpop.f32.mrb[14].mxu0  ;;  %v691_v52 = vpop.f32.mrb[14].mxu1  ;;  %v861_v49 = vsel %vm314_vm1, %v1310_v0, 0 }
 0x2a7   : > { %v699_v53 = vadd.f32 %v697_v48, %v695_v47  ;;  %v696_v54 = vmul.f32 %v650_v51, %v650_v51  ;;  %v698_v55 = vmul.f32 %v691_v52, %v691_v52  ;;  %v1064_v56 = vpop.f32.mrb[15].mxu0  ;;  %v1070_v57 = vpop.f32.mrb[15].mxu1 }
 0x2a9   : > { %1137 = vrsqrt.f32 %v699_v53  ;;  %v700_v58 = vadd.f32 %v698_v55, %v696_v54  ;;  %vm703_vm4 = vcmp.eq.f32.partialorder %v699_v53, inf  ;;  %v706_v5 = vand.u32 2147483648, %v699_v53 }
 0x2aa   : > { %vm705_vm5 = vcmp.eq.f32.partialorder %v699_v53, 0.0 }
 0x2ab   : > { %1139 = vrsqrt.f32 %v700_v58  ;;  %vm710_vm6 = vcmp.eq.f32.partialorder %v700_v58, inf  ;;  %v713_v7 = vand.u32 2147483648, %v700_v58  ;;  %vm712_vm8 = vcmp.eq.f32.partialorder %v700_v58, 0.0 }
 0x2b3   : > { %v1138_v61 = vpop.eup %1137 }
 0x2b4   : > { %v702_v62 = vmul.f32 %v1138_v61, %v699_v53 }
 0x2b5   : > { %v1140_v3 = vpop.eup %1139 }
 0x2b6   : > { %v704_v4 = vsel %vm703_vm4, %v699_v53, %v702_v62  ;;  %v709_v6 = vmul.f32 %v1140_v3, %v700_v58 }
 0x2b7   : > { %v707_v9 = vsel %vm705_vm5, %v706_v5, %v704_v4 }
 0x2b8   : > { %v711_v8 = vsel %vm710_vm6, %v700_v58, %v709_v6  ;;  %v721_v12 = vsel %vm314_vm1, %v707_v9, -inf }
 0x2b9   : > { %v714_v10 = vsel %vm712_vm8, %v713_v7, %v711_v8 }
 0x2ba   : > { %v720_v11 = vsel %vm593_vm7, %v714_v10, -1e+30 }
 0x2bb   : > { %v722_v13 = vsel %vm314_vm1, %v720_v11, -inf }
 0x2bc   : > { %v723_v14 = vmax.f32 %v721_v12, %v722_v13 }
 0x2be   : > { %v724_v15 = vrot.slane %v723_v14, 4 }
 0x2c0   : > { %v725_v16 = vmax.f32 %v723_v14, %v724_v15 }
 0x2c2   : > { %v726_v17 = vrot.slane %v725_v16, 2 }
 0x2c4   : > { %v727_v18 = vmax.f32 %v725_v16, %v726_v17 }
 0x2c6   : > { %v728_v19 = vrot.slane %v727_v18, 1 }
 0x2c8   : > { %v729_v20 = vmax.f32 %v727_v18, %v728_v19 }
 0x2ca   : > { %v730_v21 = vsub.f32 %v707_v9, %v729_v20  ;;  %v731_v22 = vsub.f32 %v720_v11, %v729_v20 }
 0x2cc   : > { %v732_v23 = vmul.f32 1.442695, %v730_v21  ;;  %v734_v24 = vmul.f32 1.442695, %v731_v22 }
 0x2ce   : > { %1141 = vpow2.f32 %v732_v23 }
 0x2cf   : > { %1143 = vpow2.f32 %v734_v24 }
 0x2d8   : > { %v1142_v25 = vpop.eup %1141 }
 0x2d9   : > { %v1144_v26 = vpop.eup %1143  ;;  %v736_v27 = vsel %vm314_vm1, %v1142_v25, 0.0 }
 0x2da   : > { %v737_v28 = vsel %vm314_vm1, %v1144_v26, 0.0 }
 0x2db   : > { %v738_v29 = vadd.f32 %v737_v28, %v736_v27 }
 0x2dd   : > { %v739_v30 = vrot.slane %v738_v29, 4 }
 0x2df   : > { %v740_v31 = vadd.f32 %v739_v30, %v738_v29 }
 0x2e1   : > { %v741_v32 = vrot.slane %v740_v31, 2 }
 0x2e3   : > { %v742_v33 = vadd.f32 %v741_v32, %v740_v31 }
 0x2e5   : > { %v743_v34 = vrot.slane %v742_v33, 1 }
 0x2e7   : > { %v744_v35 = vadd.f32 %v743_v34, %v742_v33 }
 0x2e9   : > { %1145 = vrcp.f32 %v744_v35 }
 0x2f3   : > { %v1146_v38 = vpop.eup %1145 }
 0x2f4   : > { %v746_v39 = vmul.f32 %v1146_v38, %v1142_v25  ;;  %v747_v40 = vmul.f32 %v1146_v38, %v1144_v26 }
 0x2f6   : > { %v748_v41 = vpack.c.bf16 %v747_v40, %v746_v39 }
 0x2f8   : > { %v753_v43 = vsel %vm314_vm1, %v748_v41, 0 }
 0x2f9   : > { %1072 = vmatpush3.bf16.xpose.msra.mxu0 %v753_v43 }
 0x300   : > { %1074 = vmatmul.mubr.msk.bf16.vlgmr.msra.gmra.mrb[16].mxu0 %vm314_vm1, %v588_v42 }
 0x3d3   : > { %v789_v45 = vpop.f32.mrb[16].mxu0 }
 0x3d4   : > { %796 = vst.msk [vmem:[#allocation2] sm:$0xff] %vm314_vm1, %v789_v45  ;;  %v1075_v46 = vpop.f32.mrb[17].mxu0 }
 0x3d5   : > { %v792_v47 = vpop.f32.mrb[18].mxu0 }
 0x3d6   : > { %797 = vst.msk [vmem:[#allocation3] sm:$0xff] %vm314_vm1, %v792_v47  ;;  %v1076_v48 = vpop.f32.mrb[19].mxu0 }
 0x3db   : > { %v799_v50 = vld [vmem:[#allocation2] sm:$0xff] }
 0x3dc   : > { %v806_v51 = vmul.f32 %v994_v36, %v799_v50 }
 0x3dd   : > { %v808_v37 = vld [vmem:[#allocation3] sm:$0xff] }
 0x3de   : > { %v809_v42 = vmul.f32 %v994_v36, %v808_v37  ;;  %v807_v52 = vpack.c.bf16 %v806_v51, %v806_v51 }
 0x3e0   : > { %v810_v2 = vpack.c.bf16 %v809_v42, %v809_v42 }
 0x3e2   : > { %1080 = vmatmul.mubr.msk.bf16.vlgmr.msra.gmra.mrb[16].mxu1 %vm314_vm1, %v810_v2 }
 0x3e3   : > { %1084 = vmatpush3.bf16.xpose.msra.mxu1 %v861_v49  ;;  %1085 = vmatprep.mubr.msk.bf16.mxu1 %vm1212_vm0, %v1211_v1 }
 0x3ee   : > { %1086 = vmatmul.mubr.msk.bf16.vlgmr.msra.gmra.mrb[16].mxu1 %vm314_vm1, %v807_v52 }
 0x4c1   : > { %v897_v0 = vpop.f32.mrb[16].mxu1 }
 0x4c2   : > { %903 = vst.msk [vmem:[%s296_s26] sm:$0xff] %vm314_vm1, %v897_v0  ;;  %v1087_v1 = vpop.f32.mrb[17].mxu1 }
 0x4c3   : > { %v900_v53 = vpop.f32.mrb[18].mxu1 }
 0x4c4   : > { %1160 = shalt.err (!%p1157_p3)
}
 0x4c5   : > { %s1161_s22 = scalar_lea.hbm %s1404_s17, 128  ;;  %s1165_s25 = scalar_lea.hbm %s1455_s8, 256 }
 0x4c6   : > { %p1162_p4 = scmp.ne.s32.totalorder %s1404_s17, %s1161_s22  ;;  %p1166_p9 = scmp.lt.u32.totalorder %s1404_s17, %s1455_s8 }
 0x4c7   : > { %p1167_p10 = scmp.lt.u32.totalorder %s1165_s25, %s1161_s22  ;;  %p1169_p12 = scmp.lt.u32.totalorder %s1161_s22, %s1404_s17 }
 0x4c8   : > { %p1163_p7 = pnand %p1162_p4, %p1297_p5 }
 0x4c9   : > { %p1168_p11 = por %p1167_p10, %p1166_p9 }
 0x4ca   : > { %p1164_p8 = pneg %p1163_p7 }
 0x4cb   : > { %p1170_p13 = por %p1169_p12, %p1168_p11 }
 0x4cd   : > { %p1171_p0 = pnand %p1170_p13, %p1164_p8 }
 0x4cf   : > { %1174 = shalt.err (!%p1171_p0)
}
 0x4d0   : > { %1093 = dma.vmem_to_hbm [thread:$0]  (%p1297_p5), %s1406_s10, 128, %s1404_s17, %s905_s18   ;;  %v1088_v54 = vpop.f32.mrb[19].mxu1 }
 0x4d1 PF: > { %p1099_p1 = scmp.ge.s32.totalorder %s1209_s30, 2  ;;  %s930_s13 = sand.u32 1, %s1197_s27  }
 0x4d2   : > { %s931_s19 = scalar_lea.sflag [#allocation5], %s930_s13 }
 0x4d3   : > { %p1096_p2 = pnand %p1099_p1, %p1301_p6 }
 0x4d5   : > { %1192 = dma.done.wait (!%p1096_p2), %s931_s19, 128  }
 0x4d6   : > { %1194 = vsyncadd (!%p1096_p2), %s931_s19, 4294967168  ;;  %p18_p3 = scmp.ge.s32.totalorder %s1284_s11, 4   ;;  %s1458_s27 = smov %s1201_s28 }
 0x4d7   : > { %s1459_s28 = smov %s1205_s29  ;;  %s1460_s29 = smov %s1295_s14 }
 0x4d8   : > { %s1461_s30 = smov %s1284_s11  ;;  %20 = sbr.rel (!%p18_p3) target bundleno = 3 (0x3), region = 87 }
 0x4df   :  { %936 = vsyncpa [#allocation5], 1 }
 0x4e0   :  { %938 = vsyncpa [#allocation5 + $0x1], 1 }

</bundles_post_ra>
